<compile_context>
chip_gen: v5e
topology: v5e:2x2
jax: 0.10.0
libtpu: 0.0.40
codegen_flags: <defaults>
</compile_context>

<pallas_src>
import jax
import jax.numpy as jnp
from jax.experimental import pallas as pl
from jax.experimental.pallas import tpu as pltpu


def _round_up(x, m):
    return (x + m - 1) // m * m


# Lane-tile width per grid step.  Multiple of 256 so the 256-wide v6e/v7x MXU
# streaming dimension is fully used.  Capped so double-buffered input/output
# blocks plus the (64 x tile) / (48 x tile) f32 intermediates stay well under
# 1 MiB per step -- far below v7x's 64 MiB physical VMEM.
_MAX_TILE = 1024


def _fused_decoder_kernel(x_ref, w1_ref, w2_ref, b2_ref, o_ref):
    """One lane-tile of latent pixels.

    x_ref : (cin_pad, T) bf16  latent pixels, row `cin` is the constant 1.0 (bias row)
    w1_ref: (64, cin_pad) bf16 layer-1 weight^T (+ b1 column), rows = (d1i, d1j, c1)
    w2_ref: (48, 64) bf16      block-diagonal layer-2 weight^T, rows = (c2,d1i,d2i,d1j,d2j)
    b2_ref: (48, 1) f32
    o_ref : (48, T) f32
    """
    # Layer 1 (bias folded into the matmul via the ones-row of x) + ReLU.
    h = jnp.dot(w1_ref[...], x_ref[...], preferred_element_type=jnp.float32)
    h = jnp.maximum(h, 0.0).astype(jnp.bfloat16)
    # Layer 2 (block-diagonal) + bias.
    y = jnp.dot(w2_ref[...], h, preferred_element_type=jnp.float32)
    v = y + b2_ref[...]
    # sigmoid(v) == 0.5 * (tanh(v/2) + 1): tanh lives on the otherwise-idle EUP slot.
    o_ref[...] = (0.5 * (jnp.tanh(0.5 * v) + 1.0)).astype(o_ref.dtype)


@jax.jit
def decoder_forward(x_nchw, params):
    """Full Decoder forward.  Input/output in PyTorch NCHW layout (float32)."""
    x_nchw = x_nchw.astype(jnp.float32)
    n, cin, h, w = x_nchw.shape
    w1, b1 = params["w1"], params["b1"]          # (cin, 16, 2, 2), (16,)
    w2, b2 = params["w2"], params["b2"]          # (16, 3, 2, 2),  (3,)
    c1 = w1.shape[1]                             # 16
    c2 = w2.shape[1]                             # 3

    # ---- weight packing (tiny, done once per call in JAX) -------------------
    # Layer 1 transposed: rows ordered (d1i, d1j, c1).  Append b1 as an extra
    # input column (matched by a constant-1 row in x) so the kernel has no
    # separate bias add; remaining pad columns are zero.
    cin_pad = _round_up(cin + 1, 8)              # sublane-align contraction (+1 bias row)
    w1t = jnp.transpose(w1, (2, 3, 1, 0)).reshape(4 * c1, cin)
    w1t = jnp.concatenate(
        [w1t,
         jnp.tile(b1, 4).reshape(4 * c1, 1),
         jnp.zeros((4 * c1, cin_pad - cin - 1), jnp.float32)],
        axis=1).astype(jnp.bfloat16)             # (64, cin_pad)
    # Layer 2 as a block-diagonal matrix: one (c1 -> c2*2*2) block per layer-1
    # sub-pixel (d1i, d1j).  Output rows ordered (c2, d1i, d2i, d1j, d2j) so the
    # final depth-to-space reshapes straight into NCHW.
    eye2 = jnp.eye(2, dtype=jnp.float32)
    w2bd = jnp.einsum("kcxy,ap,bq->caxbypqk", w2, eye2, eye2).reshape(
        c2 * 16, 4 * c1).astype(jnp.bfloat16)    # (48, 64)
    b2r = jnp.repeat(b2, 16).reshape(c2 * 16, 1).astype(jnp.float32)

    # ---- input packing: channels on sublanes, pixels on lanes ---------------
    m = n * h * w
    tile = min(_MAX_TILE, _round_up(m, 256))     # lane-dense, multiple of 256
    m_pad = _round_up(m, tile)
    num_tiles = m_pad // tile

    xt = jnp.transpose(x_nchw, (1, 0, 2, 3)).reshape(cin, m)
    xt = jnp.pad(xt, ((0, cin_pad - cin), (0, m_pad - m)))
    xt = xt.at[cin].set(1.0)                     # bias row (padded lanes sliced off later)
    xt = xt.astype(jnp.bfloat16)

    n_out = c2 * 16                              # 48 output features per latent pixel

    yt = pl.pallas_call(
        _fused_decoder_kernel,
        out_shape=jax.ShapeDtypeStruct((n_out, m_pad), jnp.float32),
        grid_spec=pltpu.PrefetchScalarGridSpec(
            num_scalar_prefetch=0,
            grid=(num_tiles,),
            in_specs=[
                pl.BlockSpec((cin_pad, tile), lambda i: (0, i)),
                # Constant index_map -> weights/bias are DMA'd only once.
                pl.BlockSpec((4 * c1, cin_pad), lambda i: (0, 0)),
                pl.BlockSpec((n_out, 4 * c1), lambda i: (0, 0)),
                pl.BlockSpec((n_out, 1), lambda i: (0, 0)),
            ],
            out_specs=pl.BlockSpec((n_out, tile), lambda i: (0, i)),
        ),
        compiler_params=pltpu.CompilerParams(
            dimension_semantics=("parallel",),
            vmem_limit_bytes=32 * 1024 * 1024,
        ),
    )(xt, w1t, w2bd, b2r)

    # ---- depth-to-space back to NCHW (pure layout glue, done in XLA) --------
    y = yt[:, :m].reshape(c2, 2, 2, 2, 2, n, h, w)       # (c2,d1i,d2i,d1j,d2j,n,h,w)
    y = jnp.transpose(y, (5, 0, 6, 1, 2, 7, 3, 4))       # (n,c2,h,d1i,d2i,w,d1j,d2j)
    return y.reshape(n, c2, 4 * h, 4 * w)


def init_params(key, latent_channel_dim):
    """Deterministic init matching PyTorch ConvTranspose2d shapes."""
    k1, k2, k3, k4 = jax.random.split(key, 4)
    bound1 = 1.0 / jnp.sqrt(latent_channel_dim * 2 * 2)
    bound2 = 1.0 / jnp.sqrt(16 * 2 * 2)
    return {
        "w1": jax.random.uniform(k1, (latent_channel_dim, 16, 2, 2), jnp.float32,
                                 -bound1, bound1),
        "b1": jax.random.uniform(k2, (16,), jnp.float32, -bound1, bound1),
        "w2": jax.random.uniform(k3, (16, 3, 2, 2), jnp.float32, -bound2, bound2),
        "b2": jax.random.uniform(k4, (3,), jnp.float32, -bound2, bound2),
    }


def _reference_forward(x_nchw, params):
    """Plain-JAX f32 reference (einsum transposed conv) for a sanity check."""
    def conv_t(x, wt, b):  # x: (N, Cin, H, W); wt: (Cin, Cout, 2, 2)
        nb, _, hh, ww = x.shape
        cout = wt.shape[1]
        y = jnp.einsum("nchw,cokl->nohkwl", x, wt)
        y = y.reshape(nb, cout, 2 * hh, 2 * ww)
        return y + b[None, :, None, None]

    x = conv_t(x_nchw, params["w1"], params["b1"])
    x = jnp.maximum(x, 0.0)
    x = conv_t(x, params["w2"], params["b2"])
    return jax.nn.sigmoid(x)


if __name__ == "__main__":
    latent_channel_dim = 4
    key = jax.random.PRNGKey(0)
    kx, kx2, kx3, kp = jax.random.split(key, 4)
    params = init_params(kp, latent_channel_dim)

    # bf16 MXU operands -> relax tolerance vs the f32 reference (post-sigmoid).
    TOL = 2e-2

    # CIFAR10-style latent: (batch=2, latent=4, 8, 8) -> output (2, 3, 32, 32).
    x = jax.random.normal(kx, (2, latent_channel_dim, 8, 8), dtype=jnp.float32)
    out = jax.block_until_ready(decoder_forward(x, params))
    assert out.shape == (2, 3, 32, 32), out.shape
    assert jnp.allclose(out, _reference_forward(x, params), atol=TOL), \
        float(jnp.max(jnp.abs(out - _reference_forward(x, params))))

    # Batch=1 (64 latent pixels) exercises the lane-padded path.
    x1 = jax.random.normal(kx2, (1, latent_channel_dim, 8, 8), dtype=jnp.float32)
    out1 = jax.block_until_ready(decoder_forward(x1, params))
    assert out1.shape == (1, 3, 32, 32), out1.shape
    assert jnp.allclose(out1, _reference_forward(x1, params), atol=TOL)

    # Batch=20 (1280 latent pixels) exercises a multi-step grid (grid=2, tile=1024).
    x20 = jax.random.normal(kx3, (20, latent_channel_dim, 8, 8), dtype=jnp.float32)
    out20 = jax.block_until_ready(decoder_forward(x20, params))
    assert out20.shape == (20, 3, 32, 32), out20.shape
    assert jnp.allclose(out20, _reference_forward(x20, params), atol=TOL)

    print("KERNEL_OK")
</pallas_src>

<mosaic_0001>
module attributes {stable_mosaic.version = 11 : i64} {
  func.func @_fused_decoder_kernel(%arg0: i32, %arg1: memref<8x256xbf16, #tpu.memory_space<vmem>>, %arg2: memref<64x8xbf16, #tpu.memory_space<vmem>>, %arg3: memref<48x64xbf16, #tpu.memory_space<vmem>>, %arg4: memref<48x1xf32, #tpu.memory_space<vmem>>, %arg5: memref<48x256xf32, #tpu.memory_space<vmem>>) attributes {dimension_semantics = [#tpu.dimension_semantics<parallel>], iteration_bounds = array<i64: 1>, scalar_prefetch = 0 : i64, scratch_operands = 0 : i64, tpu.core_type = #tpu.core_type<tc>, window_params = [{transform_indices = @transform_0, window_bounds = array<i64: 8, 256>}, {pipeline_mode = #tpu.pipeline_mode<synchronous>, transform_indices = @transform_1, window_bounds = array<i64: 64, 8>}, {pipeline_mode = #tpu.pipeline_mode<synchronous>, transform_indices = @transform_2, window_bounds = array<i64: 48, 64>}, {pipeline_mode = #tpu.pipeline_mode<synchronous>, transform_indices = @transform_3, window_bounds = array<i64: 48, 1>}, {transform_indices = @transform_4, window_bounds = array<i64: 48, 256>}]} {
    %c0 = arith.constant 0 : index
    %c0_0 = arith.constant 0 : index
    %0 = vector.load %arg2[%c0, %c0_0] : memref<64x8xbf16, #tpu.memory_space<vmem>>, vector<64x8xbf16>
    %c0_1 = arith.constant 0 : index
    %c0_2 = arith.constant 0 : index
    %1 = vector.load %arg1[%c0_1, %c0_2] : memref<8x256xbf16, #tpu.memory_space<vmem>>, vector<8x256xbf16>
    %cst = arith.constant dense<0.000000e+00> : vector<64x256xf32>
    %2 = tpu.matmul %0, %1, %cst {dimension_numbers = #tpu.dot_dimension_numbers<[1], [0], [0], [1], [0, 0, 1, 1], [], []>} : vector<64x8xbf16>, vector<8x256xbf16>, vector<64x256xf32> -> vector<64x256xf32>
    %cst_3 = arith.constant 0.000000e+00 : f32
    %3 = vector.broadcast %cst_3 : f32 to vector<64x256xf32>
    %4 = arith.maximumf %2, %3 : vector<64x256xf32>
    %5 = arith.truncf %4 : vector<64x256xf32> to vector<64x256xbf16>
    %c0_4 = arith.constant 0 : index
    %c0_5 = arith.constant 0 : index
    %6 = vector.load %arg3[%c0_4, %c0_5] : memref<48x64xbf16, #tpu.memory_space<vmem>>, vector<48x64xbf16>
    %cst_6 = arith.constant dense<0.000000e+00> : vector<48x256xf32>
    %7 = tpu.matmul %6, %5, %cst_6 {dimension_numbers = #tpu.dot_dimension_numbers<[1], [0], [0], [1], [0, 0, 1, 1], [], []>} : vector<48x64xbf16>, vector<64x256xbf16>, vector<48x256xf32> -> vector<48x256xf32>
    %c0_7 = arith.constant 0 : index
    %c0_8 = arith.constant 0 : index
    %8 = vector.load %arg4[%c0_7, %c0_8] : memref<48x1xf32, #tpu.memory_space<vmem>>, vector<48x1xf32>
    %9 = vector.broadcast %8 : vector<48x1xf32> to vector<48x256xf32>
    %10 = arith.addf %7, %9 : vector<48x256xf32>
    %cst_9 = arith.constant 5.000000e-01 : f32
    %11 = vector.broadcast %cst_9 : f32 to vector<48x256xf32>
    %12 = arith.mulf %11, %10 : vector<48x256xf32>
    %13 = math.tanh %12 : vector<48x256xf32>
    %cst_10 = arith.constant 1.000000e+00 : f32
    %14 = vector.broadcast %cst_10 : f32 to vector<48x256xf32>
    %15 = arith.addf %13, %14 : vector<48x256xf32>
    %cst_11 = arith.constant 5.000000e-01 : f32
    %16 = vector.broadcast %cst_11 : f32 to vector<48x256xf32>
    %17 = arith.mulf %16, %15 : vector<48x256xf32>
    %c0_12 = arith.constant 0 : index
    %c0_13 = arith.constant 0 : index
    %18 = vector.load %arg5[%c0_12, %c0_13] : memref<48x256xf32, #tpu.memory_space<vmem>>, vector<48x256xf32>
    tpu.vector_store %arg5[%c0_12, %c0_13], %17 {strides = array<i32>} : memref<48x256xf32, #tpu.memory_space<vmem>>, vector<48x256xf32>,
    return
  }
  func.func @transform_0(%arg0: i32) -> (i32, i32) {
    %c0_i32 = arith.constant 0 : i32
    %c0_i32_0 = arith.constant 0 : i32
    return %c0_i32, %arg0 : i32, i32
  }
  func.func @transform_1(%arg0: i32) -> (i32, i32) {
    %c0_i32 = arith.constant 0 : i32
    %c0_i32_0 = arith.constant 0 : i32
    %c0_i32_1 = arith.constant 0 : i32
    return %c0_i32, %c0_i32_0 : i32, i32
  }
  func.func @transform_2(%arg0: i32) -> (i32, i32) {
    %c0_i32 = arith.constant 0 : i32
    %c0_i32_0 = arith.constant 0 : i32
    %c0_i32_1 = arith.constant 0 : i32
    return %c0_i32, %c0_i32_0 : i32, i32
  }
  func.func @transform_3(%arg0: i32) -> (i32, i32) {
    %c0_i32 = arith.constant 0 : i32
    %c0_i32_0 = arith.constant 0 : i32
    %c0_i32_1 = arith.constant 0 : i32
    return %c0_i32, %c0_i32_0 : i32, i32
  }
  func.func @transform_4(%arg0: i32) -> (i32, i32) {
    %c0_i32 = arith.constant 0 : i32
    %c0_i32_0 = arith.constant 0 : i32
    return %c0_i32, %arg0 : i32, i32
  }
}

</mosaic_0001>

<bundles_post_ra>
// kernel: tile.0
= control target key start
LH: loop header
LB: loop body
LE: loop exit
PB: predicated region body
PF: predicated region fallthrough
CT: control target
= control target key end

     0   :  { %s49_s8 = smov 16   ;;  %s50_s9 = smov 32   ;;  %vm18_vm0 = vcmask 130048   ;;  %vm24_vm1 = vcmask 523648   ;;  %vm30_vm2 = vcmask 392448   ;;  %vm36_vm3 = vcmask 261248   ;;  %s67_s0 = inlined_call_operand.vmem [shape: bf16[4,16], index: 0, kind: input, shape index: {}]   ;;  %s68_s1 = inlined_call_operand.vmem [shape: bf16[64,1], index: 1, kind: output, shape index: {}]  }
   0x1   :  { %v13_v0 = vld [vmem:[%s67_s0] sm:$0x3]  ;;  %s48_s0 = smov 48  }
   0x2   :  { %v14_v1 = vunpack.c.l.bf16 %v13_v0 }
   0x4   :  { %16 = vst [vmem:[#allocation1] sm:$0xf] %v14_v1 }
   0xb   :  { %v21_v2 = vld [vmem:[#allocation1 + $0x3] sm:$0x1]   ;;  %v33_v3 = vld [vmem:[#allocation1 + $0x1] sm:$0x1]   ;;  %v27_v4 = vld [vmem:[#allocation1 + $0x2] sm:$0x1]  }
   0xc   :  { %22 = vrot.lane.b32.xlu0 %v21_v2, %s48_s0  ;;  %34 = vrot.lane.b32.xlu1 %v33_v3, %s49_s8  ;;  %v17_v5 = vld [vmem:[#allocation1] sm:$0x1]  }
   0xd   :  { %19 = vst.msk [vmem:[#allocation0] sm:$0x1] %vm18_vm0, %v17_v5  }
  0x14   :  { %28 = vrot.lane.b32.xlu0 %v27_v4, %s50_s9 }
  0x7e   :  { %v23_v6 = vpop.permute.xlu0 %22   ;;  %v35_v7 = vpop.permute.xlu1 %34  }
  0x7f   :  { %25 = vst.msk [vmem:[#allocation0] sm:$0x1] %vm24_vm1, %v23_v6  }
  0x86   :  { %v29_v8 = vpop.permute.xlu0 %28  }
  0x87   :  { %31 = vst.msk [vmem:[#allocation0] sm:$0x1] %vm30_vm2, %v29_v8  }
  0x88   :  { %37 = vst.msk [vmem:[#allocation0] sm:$0x1] %vm36_vm3, %v35_v7  }
  0x8f   :  { %v40_v9 = vld [vmem:[#allocation0] sm:$0x3] }
  0x90   :  { %v41_v10 = vpack.c.bf16 0.0, %v40_v9 }
  0x92   :  { %44 = vst [vmem:[%s68_s1] sm:$0x1] %v41_v10 }

// kernel: decoder_forward.1
= control target key start
LH: loop header
LB: loop body
LE: loop exit
PB: predicated region body
PF: predicated region fallthrough
CT: control target
= control target key end

     0   :  { %vm65_vm0 = vcmask 1043456   ;;  %vm52_vm1 = vcmask 64512   ;;  %v410_v23 = vmov 0   ;;  %vm211_vm2 = vcmask 523264   ;;  %s520_s0 = inlined_call_operand.vmem [shape: bf16[8,256], index: 0, kind: input, shape index: {}]   ;;  %s521_s1 = inlined_call_operand.vmem [shape: bf16[64,8], index: 1, kind: input, shape index: {}]   ;;  %s522_s3 = inlined_call_operand.vmem [shape: f32[48,1], index: 3, kind: input, shape index: {}]   ;;  %s523_s2 = inlined_call_operand.vmem [shape: bf16[48,64], index: 2, kind: input, shape index: {}]   ;;  %s524_s4 = inlined_call_operand.vmem [shape: f32[48,256], index: 4, kind: output, shape index: {}]  }
   0x1   :  { %v26_v0 = vld [vmem:[%s520_s0] sm:$0xff]  ;;  %v376_v8 = vld [vmem:[%s521_s1 + $0x8] sm:$0xff]  ;;  %v377_v9 = vld [vmem:[%s521_s1 + $0x10] sm:$0xff]  ;;  %383 = vset.pattern.permute.xlu0 %v410_v23  ;;  %384 = vset.pattern.permute.xlu1 %v410_v23 }
   0x2   :  { %v48_v1 = vunpack.c.l.b16 %v26_v0  ;;  %v49_v2 = vunpack.c.h.b16 %v26_v0  ;;  %v375_v7 = vld [vmem:[%s521_s1] sm:$0xff]  ;;  %v378_v10 = vld [vmem:[%s521_s1 + $0x18] sm:$0xff]  ;;  %385 = vset.pattern.permute.xlu2 %v410_v23  ;;  %v161_v49 = vld [vmem:[%s522_s3 + $0x8] sm:$0xff] }
   0x3   :  { %v160_v36 = vld [vmem:[%s522_s3] sm:$0xff]  ;;  %v162_v55 = vld [vmem:[%s522_s3 + $0x10] sm:$0xff]  ;;  %v163_v57 = vld [vmem:[%s522_s3 + $0x18] sm:$0xff] }
   0x4   :  { %v50_v3 = vpack.c.b16 %v48_v1, %v48_v1  ;;  %v51_v4 = vpack.c.b16 %v49_v2, %v49_v2  ;;  %168 = vperm.xlu0 %383, %v160_v36   ;;  %v379_v54 = vld [vmem:[%s523_s2] sm:$0xff]  ;;  %178 = vperm.xlu1 %384, %v162_v55   ;;  %v165_v58 = vld [vmem:[%s522_s3 + $0x28] sm:$0xff]  ;;  %v381_v60 = vld [vmem:[%s523_s2 + $0x10] sm:$0xff] }
   0x5   :  { %v164_v56 = vld [vmem:[%s522_s3 + $0x20] sm:$0xff]  ;;  %v380_v59 = vld [vmem:[%s523_s2 + $0x8] sm:$0xff] }
   0x6   :  { %v67_v5 = vsel %vm65_vm0, %v50_v3, 0  ;;  %v70_v6 = vsel %vm65_vm0, %v51_v4, 0  ;;  %188 = vperm.xlu2 %385, %v164_v56  }
   0x7   :  { %79 = vmatpush.bf16.msra.mxu0 %v67_v5  ;;  %108 = vmatpush.bf16.msra.mxu1 %v70_v6 }
   0xa   :  { %349 = vmatmul.msk.bf16.vlgmr.msra.gmra.mxu0 %vm52_vm1, %v375_v7  ;;  %353 = vmatmul.msk.bf16.vlgmr.msra.gmra.mxu1 %vm52_vm1, %v375_v7 }
   0xc   :  { %173 = vperm.xlu0 %383, %v161_v49   ;;  %183 = vperm.xlu1 %384, %v163_v57  }
   0xe   :  { %193 = vperm.xlu2 %385, %v165_v58  }
  0x1a   :  { %350 = vmatmul.msk.bf16.gmra.mxu0 %vm52_vm1, %v376_v8  ;;  %354 = vmatmul.msk.bf16.gmra.mxu1 %vm52_vm1, %v376_v8 }
  0x2a   :  { %351 = vmatmul.msk.bf16.gmra.mxu0 %vm52_vm1, %v377_v9  ;;  %355 = vmatmul.msk.bf16.gmra.mxu1 %vm52_vm1, %v377_v9 }
  0x3a   :  { %352 = vmatmul.msk.bf16.gmra.mxu0 %vm52_vm1, %v378_v10  ;;  %356 = vmatmul.msk.bf16.gmra.mxu1 %vm52_vm1, %v378_v10 }
  0x76   :  { %v169_v61 = vpop.permute.xlu0 %168 }
  0x7e   :  { %v174_v4 = vpop.permute.xlu0 %173 }
  0x87   :  { %v81_v11 = vpop.f32.mrf.mxu0  ;;  %v110_v12 = vpop.f32.mrf.mxu1 }
  0x88   :  { %v130_v50 = vmax.f32 %v81_v11, 0.0  ;;  %v131_v51 = vmax.f32 %v110_v12, 0.0 }
  0x8f   :  { %v83_v13 = vpop.f32.mrf.mxu0  ;;  %v112_v14 = vpop.f32.mrf.mxu1 }
  0x90   :  { %v132_v45 = vmax.f32 %v83_v13, 0.0  ;;  %v133_v46 = vmax.f32 %v112_v14, 0.0  ;;  %v179_v14 = vpop.permute.xlu1 %178 }
  0x92   :  { %v146_v52 = vpack.c.bf16 %v132_v45, %v130_v50  ;;  %v147_v53 = vpack.c.bf16 %v133_v46, %v131_v51 }
  0x97   :  { %v86_v15 = vpop.f32.mrf.mxu0  ;;  %v115_v16 = vpop.f32.mrf.mxu1 }
  0x98   :  { %v134_v43 = vmax.f32 %v86_v15, 0.0  ;;  %v135_v44 = vmax.f32 %v115_v16, 0.0 }
  0x9f   :  { %v88_v17 = vpop.f32.mrf.mxu0  ;;  %v117_v18 = vpop.f32.mrf.mxu1 }
  0xa0   :  { %v136_v39 = vmax.f32 %v88_v17, 0.0  ;;  %v137_v40 = vmax.f32 %v117_v18, 0.0 }
  0xa2   :  { %v148_v47 = vpack.c.bf16 %v136_v39, %v134_v43  ;;  %v149_v48 = vpack.c.bf16 %v137_v40, %v135_v44 }
  0xa7   :  { %v91_v19 = vpop.f32.mrf.mxu0  ;;  %v120_v20 = vpop.f32.mrf.mxu1 }
  0xa8   :  { %v138_v37 = vmax.f32 %v91_v19, 0.0  ;;  %v139_v38 = vmax.f32 %v120_v20, 0.0 }
  0xaf   :  { %v93_v21 = vpop.f32.mrf.mxu0  ;;  %v122_v22 = vpop.f32.mrf.mxu1 }
  0xb0   :  { %v140_v32 = vmax.f32 %v93_v21, 0.0  ;;  %v141_v33 = vmax.f32 %v122_v22, 0.0 }
  0xb2   :  { %v150_v41 = vpack.c.bf16 %v140_v32, %v138_v37  ;;  %v151_v42 = vpack.c.bf16 %v141_v33, %v139_v38 }
  0xb7   :  { %v96_v24 = vpop.f32.mrf.mxu0  ;;  %v125_v25 = vpop.f32.mrf.mxu1 }
  0xb8   :  { %v142_v28 = vmax.f32 %v96_v24, 0.0  ;;  %v143_v29 = vmax.f32 %v125_v25, 0.0 }
  0xbf   :  { %v98_v26 = vpop.f32.mrf.mxu0  ;;  %v127_v27 = vpop.f32.mrf.mxu1 }
  0xc0   :  { %v144_v30 = vmax.f32 %v98_v26, 0.0  ;;  %v145_v31 = vmax.f32 %v127_v27, 0.0 }
  0xc2   :  { %v152_v34 = vpack.c.bf16 %v144_v30, %v142_v28  ;;  %v153_v35 = vpack.c.bf16 %v145_v31, %v143_v29  ;;  %v184_v29 = vpop.permute.xlu1 %183 }
  0xc4   :  { %225 = vmatpush.bf16.msra.mxu2 %v152_v34  ;;  %249 = vmatpush.bf16.msra.mxu3 %v153_v35 }
  0xc8   :  { %226 = vmatpush.bf16.msra.mxu2 %v150_v41  ;;  %250 = vmatpush.bf16.msra.mxu3 %v151_v42  ;;  %v189_v41 = vpop.permute.xlu2 %188 }
  0xcc   :  { %227 = vmatpush.bf16.msra.mxu2 %v148_v47  ;;  %251 = vmatpush.bf16.msra.mxu3 %v149_v48 }
  0xd0   :  { %228 = vmatpush.bf16.msra.mxu2 %v146_v52  ;;  %252 = vmatpush.bf16.msra.mxu3 %v147_v53  ;;  %v194_v56 = vpop.permute.xlu2 %193 }
  0xd3   :  { %369 = vmatmul.msk.bf16.vlgmr.msra.gmra.mxu2 %vm211_vm2, %v379_v54  ;;  %372 = vmatmul.msk.bf16.vlgmr.msra.gmra.mxu3 %vm211_vm2, %v379_v54 }
  0xe3   :  { %370 = vmatmul.msk.bf16.gmra.mxu2 %vm211_vm2, %v380_v59  ;;  %373 = vmatmul.msk.bf16.gmra.mxu3 %vm211_vm2, %v380_v59 }
  0xf3   :  { %371 = vmatmul.msk.bf16.gmra.mxu2 %vm211_vm2, %v381_v60  ;;  %374 = vmatmul.msk.bf16.gmra.mxu3 %vm211_vm2, %v381_v60 }
 0x156   :  { %v230_v62 = vpop.f32.mrf.mxu2  ;;  %v254_v63 = vpop.f32.mrf.mxu3 }
 0x157   :  { %v231_v0 = vadd.f32 %v230_v62, %v169_v61  ;;  %v255_v1 = vadd.f32 %v254_v63, %v169_v61 }
 0x159   :  { %v269_v2 = vmul.f32 0.5, %v231_v0  ;;  %v270_v3 = vmul.f32 0.5, %v255_v1 }
 0x15b   :  { %386 = vtanh.f32 %v269_v2 }
 0x15c   :  { %388 = vtanh.f32 %v270_v3 }
 0x15e   :  { %v232_v5 = vpop.f32.mrf.mxu2  ;;  %v256_v6 = vpop.f32.mrf.mxu3 }
 0x15f   :  { %v233_v7 = vadd.f32 %v232_v5, %v174_v4  ;;  %v257_v8 = vadd.f32 %v256_v6, %v174_v4 }
 0x161   :  { %v387_v9 = vpop.eup %386  ;;  %v271_v10 = vmul.f32 0.5, %v233_v7  ;;  %v272_v11 = vmul.f32 0.5, %v257_v8 }
 0x162   :  { %v389_v12 = vpop.eup %388  ;;  %v293_v13 = vadd.f32 1.0, %v387_v9 }
 0x163   :  { %v294_v15 = vadd.f32 1.0, %v389_v12  ;;  %390 = vtanh.f32 %v271_v10 }
 0x164   :  { %v305_v16 = vmul.f32 0.5, %v293_v13  ;;  %392 = vtanh.f32 %v272_v11 }
 0x165   :  { %v306_v17 = vmul.f32 0.5, %v294_v15 }
 0x166   :  { %317 = vst [vmem:[%s524_s4] sm:$0xff] %v305_v16  ;;  %v235_v18 = vpop.f32.mrf.mxu2  ;;  %v259_v19 = vpop.f32.mrf.mxu3 }
 0x167   :  { %318 = vst [vmem:[%s524_s4 + $0x8] sm:$0xff] %v306_v17  ;;  %v236_v20 = vadd.f32 %v235_v18, %v179_v14  ;;  %v260_v21 = vadd.f32 %v259_v19, %v179_v14 }
 0x169   :  { %v391_v22 = vpop.eup %390  ;;  %v273_v23 = vmul.f32 0.5, %v236_v20  ;;  %v274_v24 = vmul.f32 0.5, %v260_v21 }
 0x16a   :  { %v393_v25 = vpop.eup %392  ;;  %v295_v26 = vadd.f32 1.0, %v391_v22 }
 0x16b   :  { %v296_v27 = vadd.f32 1.0, %v393_v25  ;;  %394 = vtanh.f32 %v273_v23 }
 0x16c   :  { %v307_v28 = vmul.f32 0.5, %v295_v26  ;;  %396 = vtanh.f32 %v274_v24 }
 0x16d   :  { %v308_v30 = vmul.f32 0.5, %v296_v27 }
 0x16e   :  { %319 = vst [vmem:[%s524_s4 + $0x10] sm:$0xff] %v307_v28  ;;  %v237_v31 = vpop.f32.mrf.mxu2  ;;  %v261_v32 = vpop.f32.mrf.mxu3 }
 0x16f   :  { %320 = vst [vmem:[%s524_s4 + $0x18] sm:$0xff] %v308_v30  ;;  %v238_v33 = vadd.f32 %v237_v31, %v184_v29  ;;  %v262_v34 = vadd.f32 %v261_v32, %v184_v29 }
 0x171   :  { %v395_v35 = vpop.eup %394  ;;  %v275_v36 = vmul.f32 0.5, %v238_v33  ;;  %v276_v37 = vmul.f32 0.5, %v262_v34 }
 0x172   :  { %v397_v38 = vpop.eup %396  ;;  %v297_v39 = vadd.f32 1.0, %v395_v35 }
 0x173   :  { %v298_v40 = vadd.f32 1.0, %v397_v38  ;;  %398 = vtanh.f32 %v275_v36 }
 0x174   :  { %v309_v42 = vmul.f32 0.5, %v297_v39  ;;  %400 = vtanh.f32 %v276_v37 }
 0x175   :  { %v310_v43 = vmul.f32 0.5, %v298_v40 }
 0x176   :  { %321 = vst [vmem:[%s524_s4 + $0x20] sm:$0xff] %v309_v42  ;;  %v240_v44 = vpop.f32.mrf.mxu2  ;;  %v264_v45 = vpop.f32.mrf.mxu3 }
 0x177   :  { %322 = vst [vmem:[%s524_s4 + $0x28] sm:$0xff] %v310_v43  ;;  %v241_v46 = vadd.f32 %v240_v44, %v189_v41  ;;  %v265_v47 = vadd.f32 %v264_v45, %v189_v41 }
 0x179   :  { %v399_v48 = vpop.eup %398  ;;  %v277_v49 = vmul.f32 0.5, %v241_v46  ;;  %v278_v50 = vmul.f32 0.5, %v265_v47 }
 0x17a   :  { %v401_v51 = vpop.eup %400  ;;  %v299_v52 = vadd.f32 1.0, %v399_v48 }
 0x17b   :  { %v300_v53 = vadd.f32 1.0, %v401_v51  ;;  %402 = vtanh.f32 %v277_v49 }
 0x17c   :  { %v311_v54 = vmul.f32 0.5, %v299_v52  ;;  %404 = vtanh.f32 %v278_v50 }
 0x17d   :  { %v312_v55 = vmul.f32 0.5, %v300_v53 }
 0x17e   :  { %323 = vst [vmem:[%s524_s4 + $0x30] sm:$0xff] %v311_v54  ;;  %v242_v57 = vpop.f32.mrf.mxu2  ;;  %v266_v58 = vpop.f32.mrf.mxu3 }
 0x17f   :  { %324 = vst [vmem:[%s524_s4 + $0x38] sm:$0xff] %v312_v55  ;;  %v243_v59 = vadd.f32 %v242_v57, %v194_v56  ;;  %v267_v60 = vadd.f32 %v266_v58, %v194_v56 }
 0x181   :  { %v403_v61 = vpop.eup %402  ;;  %v279_v62 = vmul.f32 0.5, %v243_v59  ;;  %v280_v63 = vmul.f32 0.5, %v267_v60 }
 0x182   :  { %v405_v0 = vpop.eup %404  ;;  %v301_v1 = vadd.f32 1.0, %v403_v61 }
 0x183   :  { %v302_v2 = vadd.f32 1.0, %v405_v0  ;;  %406 = vtanh.f32 %v279_v62 }
 0x184   :  { %v313_v3 = vmul.f32 0.5, %v301_v1  ;;  %408 = vtanh.f32 %v280_v63 }
 0x185   :  { %v314_v4 = vmul.f32 0.5, %v302_v2 }
 0x186   :  { %325 = vst [vmem:[%s524_s4 + $0x40] sm:$0xff] %v313_v3 }
 0x187   :  { %326 = vst [vmem:[%s524_s4 + $0x48] sm:$0xff] %v314_v4 }
 0x189   :  { %v407_v5 = vpop.eup %406 }
 0x18a   :  { %v409_v6 = vpop.eup %408  ;;  %v303_v7 = vadd.f32 1.0, %v407_v5 }
 0x18b   :  { %v304_v8 = vadd.f32 1.0, %v409_v6 }
 0x18c   :  { %v315_v9 = vmul.f32 0.5, %v303_v7 }
 0x18d   :  { %v316_v10 = vmul.f32 0.5, %v304_v8 }
 0x18e   :  { %327 = vst [vmem:[%s524_s4 + $0x50] sm:$0xff] %v315_v9 }
 0x18f   :  { %328 = vst [vmem:[%s524_s4 + $0x58] sm:$0xff] %v316_v10 }

</bundles_post_ra>
